<compile_context>
chip_gen: v6e
topology: v6e:2x2x1
jax: 0.10.0
libtpu: 0.0.40
codegen_flags: <defaults>
</compile_context>

<pallas_src>
import math

import jax
import jax.numpy as jnp
from jax.experimental import pallas as pl
from jax.experimental.pallas import tpu as pltpu


# ---------------------------------------------------------------------------
# Kernel: y = x_rows @ (selection * folded taps) + b_eff
# ---------------------------------------------------------------------------
def _up_pool_decoder_kernel(xf_ref, sw_ref, beff_ref, o_ref):
    # xf_ref:   (TR, G)   flattened input rows for this grid step
    # sw_ref:   (G, W)    selection x folded-tap weights (tiny constant block)
    # beff_ref: (1, 1)    folded scalar bias (SMEM)
    # o_ref:    (TR, W)   lane-dense output rows (W = G*pool, multiple of 128)
    y = jnp.dot(xf_ref[...], sw_ref[...], preferred_element_type=jnp.float32)
    o_ref[...] = (y + beff_ref[0, 0]).astype(o_ref.dtype)


def _row_tile(R, W):
    """Rows per grid step: ~1 MiB of f32 output per step, a multiple of 8, and
    split into >= 2 programs when there is enough work (v7x megacore)."""
    tr = (1 << 20) // (W * 4)
    tr = max(8, min(2048, (tr // 8) * 8))
    if R <= tr:
        if R >= 16:
            tr = ((R + 1) // 2 + 7) // 8 * 8   # ~half the rows, multiple of 8
        else:
            tr = R                             # single tile == full dim (legal)
    return tr


def up_pool_decoder(x, params, *, pool):
    """x: (B, L) float32 -> (B, L*pool, 1). Pallas-backed fused forward."""
    assert x.ndim == 2, "UpPoolDecoder forward only supports 2-D (B, L) input"
    w_ct = params["w_convt"]   # (1, d_model, pool)  PyTorch ConvTranspose1d layout
    b_ct = params["b_convt"]   # (d_model,)
    w_l = params["w_linear"]   # (1, d_model)        PyTorch Linear layout
    b_l = params["b_linear"]   # (1,)

    B, L = x.shape
    d_model = w_ct.shape[1]
    assert w_ct.shape == (1, d_model, pool)
    Lp = L * pool
    f32 = jnp.float32

    # --- fold Linear(d_model -> 1) into the ConvTranspose taps (wrapper-side,
    #     O(d_model*pool) work; no large per-call arrays are materialised). ----
    w_eff = jnp.einsum("c,ck->k", w_l[0].astype(f32), w_ct[0].astype(f32))  # (pool,)
    b_eff = (jnp.dot(w_l[0].astype(f32), b_ct.astype(f32))
             + b_l.astype(f32)[0]).reshape(1, 1)                            # (1, 1)

    # --- flatten (B, L) -> (R_pad, G) rows; upsample = one tiny (G, W) matmul
    #     with W = G*pool a multiple of 128 (lane-dense output stores). --------
    G = 128 // math.gcd(128, pool)
    W = G * pool
    N = B * L
    R = -(-N // G)                              # cdiv
    TR = _row_tile(R, W)
    R_pad = -(-R // TR) * TR
    n_steps = R_pad // TR

    x_flat = x.astype(f32).reshape(-1)
    if R_pad * G != N:
        x_flat = jnp.pad(x_flat, (0, R_pad * G - N))
    xf = x_flat.reshape(R_pad, G)

    # Selection * folded-weight matrix: sw[g, g*pool + k] = w_eff[k] (else 0).
    sw = (jnp.eye(G, dtype=f32)[:, :, None] * w_eff[None, None, :]).reshape(G, W)

    out = pl.pallas_call(
        _up_pool_decoder_kernel,
        out_shape=jax.ShapeDtypeStruct((R_pad, W), f32),
        grid=(n_steps,),
        in_specs=[
            pl.BlockSpec((TR, G), lambda r: (r, 0)),            # input rows
            pl.BlockSpec((G, W), lambda r: (0, 0)),             # tiny constant
            pl.BlockSpec(memory_space=pltpu.MemorySpace.SMEM),  # scalar bias
        ],
        out_specs=pl.BlockSpec((TR, W), lambda r: (r, 0)),
        compiler_params=pltpu.CompilerParams(
            dimension_semantics=("parallel",),
        ),
    )(xf, sw, b_eff)

    # (R_pad, W) row-major is exactly (B, Lp) row-major (plus trailing padding),
    # so this reshape/slice moves no data when shapes divide evenly.
    return out.reshape(-1)[: N * pool].reshape(B, Lp, 1)


# ---------------------------------------------------------------------------
# Parameter init (deterministic; shapes match the PyTorch module __init__).
# ---------------------------------------------------------------------------
def init_params(key, d_model, pool):
    k1, k2, k3, k4 = jax.random.split(key, 4)
    bound_ct = 1.0 / math.sqrt(1 * pool)
    bound_l = 1.0 / math.sqrt(d_model)
    return {
        "w_convt": jax.random.uniform(k1, (1, d_model, pool), jnp.float32,
                                      -bound_ct, bound_ct),
        "b_convt": jax.random.uniform(k2, (d_model,), jnp.float32,
                                      -bound_ct, bound_ct),
        "w_linear": jax.random.uniform(k3, (1, d_model), jnp.float32,
                                       -bound_l, bound_l),
        "b_linear": jax.random.uniform(k4, (1,), jnp.float32, -bound_l, bound_l),
    }


# ---------------------------------------------------------------------------
# Pure-JAX reference (unfused conv-transpose + linear) to validate the fold.
# ---------------------------------------------------------------------------
def _ref_forward(x, params, pool):
    w0 = params["w_convt"][0]                         # (d_model, pool)
    b_ct = params["b_convt"]                          # (d_model,)
    w_l = params["w_linear"]                          # (1, d_model)
    b_l = params["b_linear"]                          # (1,)
    B, L = x.shape
    d_model = w0.shape[0]
    # ConvTranspose1d with stride == kernel_size, padding 0:
    #   h[b, l*pool + k, c] = x[b, l] * w0[c, k] + b_ct[c]
    h = x[:, :, None, None] * w0.T[None, None, :, :] + b_ct[None, None, None, :]
    h = h.reshape(B, L * pool, d_model)               # channels-last (B, Lp, d_model)
    return h @ w_l.T + b_l                            # (B, Lp, 1)


if __name__ == "__main__":
    key = jax.random.PRNGKey(0)
    configs = [
        # (B, L, d_model, pool)
        (2, 16, 32, 4),     # tiny shape (single-tile path)
        (4, 512, 64, 2),    # multi-program grid (2 parallel steps)
        (3, 10, 16, 3),     # padding path + pool that does not divide 128
    ]
    for cfg in configs:
        B, L, d_model, pool = cfg
        kx, kp, key = jax.random.split(key, 3)
        x = jax.random.normal(kx, (B, L), jnp.float32)
        params = init_params(kp, d_model, pool)

        out = jax.block_until_ready(up_pool_decoder(x, params, pool=pool))
        assert out.shape == (B, L * pool, 1), (cfg, out.shape)

        ref = jax.block_until_ready(_ref_forward(x, params, pool))
        err = float(jnp.max(jnp.abs(out - ref)))
        assert jnp.allclose(out, ref, atol=1e-4, rtol=1e-4), (cfg, err)

    print("KERNEL_OK")
</pallas_src>

<mosaic_0001>
module attributes {stable_mosaic.version = 11 : i64} {
  func.func @_up_pool_decoder_kernel(%arg0: i32, %arg1: memref<1x32xf32, #tpu.memory_space<vmem>>, %arg2: memref<32x128xf32, #tpu.memory_space<vmem>>, %arg3: memref<1x1xf32, #tpu.memory_space<smem>>, %arg4: memref<1x128xf32, #tpu.memory_space<vmem>>) attributes {dimension_semantics = [#tpu.dimension_semantics<parallel>], iteration_bounds = array<i64: 1>, scalar_prefetch = 0 : i64, scratch_operands = 0 : i64, tpu.core_type = #tpu.core_type<tc>, window_params = [{transform_indices = @transform_0, window_bounds = array<i64: 1, 32>}, {pipeline_mode = #tpu.pipeline_mode<synchronous>, transform_indices = @transform_1, window_bounds = array<i64: 32, 128>}, {transform_indices = @transform_2, window_bounds = array<i64: 1, 1>}, {transform_indices = @transform_3, window_bounds = array<i64: 1, 128>}]} {
    %c0 = arith.constant 0 : index
    %c0_0 = arith.constant 0 : index
    %0 = vector.load %arg1[%c0, %c0_0] : memref<1x32xf32, #tpu.memory_space<vmem>>, vector<1x32xf32>
    %c0_1 = arith.constant 0 : index
    %c0_2 = arith.constant 0 : index
    %1 = vector.load %arg2[%c0_1, %c0_2] : memref<32x128xf32, #tpu.memory_space<vmem>>, vector<32x128xf32>
    %cst = arith.constant dense<0.000000e+00> : vector<1x128xf32>
    %2 = tpu.matmul %0, %1, %cst {dimension_numbers = #tpu.dot_dimension_numbers<[1], [0], [0], [1], [0, 0, 1, 1], [], []>} : vector<1x32xf32>, vector<32x128xf32>, vector<1x128xf32> -> vector<1x128xf32>
    %c0_3 = arith.constant 0 : index
    %c0_4 = arith.constant 0 : index
    %3 = memref.load %arg3[%c0_3, %c0_4] : memref<1x1xf32, #tpu.memory_space<smem>>
    %4 = vector.broadcast %3 : f32 to vector<1x128xf32>
    %5 = arith.addf %2, %4 : vector<1x128xf32>
    %c0_5 = arith.constant 0 : index
    %c0_6 = arith.constant 0 : index
    %6 = vector.load %arg4[%c0_5, %c0_6] : memref<1x128xf32, #tpu.memory_space<vmem>>, vector<1x128xf32>
    tpu.vector_store %arg4[%c0_5, %c0_6], %5 {strides = array<i32>} : memref<1x128xf32, #tpu.memory_space<vmem>>, vector<1x128xf32>,
    return
  }
  func.func @transform_0(%arg0: i32) -> (i32, i32) {
    %c0_i32 = arith.constant 0 : i32
    %c0_i32_0 = arith.constant 0 : i32
    return %arg0, %c0_i32 : i32, i32
  }
  func.func @transform_1(%arg0: i32) -> (i32, i32) {
    %c0_i32 = arith.constant 0 : i32
    %c0_i32_0 = arith.constant 0 : i32
    %c0_i32_1 = arith.constant 0 : i32
    return %c0_i32, %c0_i32_0 : i32, i32
  }
  func.func @transform_2(%arg0: i32) -> (i32, i32) {
    %c0_i32 = arith.constant 0 : i32
    %c0_i32_0 = arith.constant 0 : i32
    %c0_i32_1 = arith.constant 0 : i32
    return %c0_i32, %c0_i32_0 : i32, i32
  }
  func.func @transform_3(%arg0: i32) -> (i32, i32) {
    %c0_i32 = arith.constant 0 : i32
    %c0_i32_0 = arith.constant 0 : i32
    return %arg0, %c0_i32 : i32, i32
  }
}

</mosaic_0001>

<bundles_post_ra>
// kernel: tpu_custom_call.1
= control target key start
LH: loop header
LB: loop body
LE: loop exit
PB: predicated region body
PF: predicated region fallthrough
CT: control target
= control target key end

     0   :  { %9 = vsyncpa [#allocation4], 0  ;;  %s232_s0 = inlined_call_operand.vmem [shape: f32[1,32], index: 0, kind: input, shape index: {}]   ;;  %s233_s1 = inlined_call_operand.hbm [shape: f32[32,128], index: 1, kind: input, shape index: {}]   ;;  %s234_s2 = inlined_call_operand.<no memory space> [shape: f32[1,1], index: 2, kind: input, shape index: {}]   ;;  %s235_s3 = inlined_call_operand.hbm [shape: f32[1,128], index: 3, kind: output, shape index: {}]  }
   0x1   :  { %10 = vsyncpa [#allocation5], 0  ;;  %s194_s12 = smov [#allocation3]  }
   0x2   :  { %s18_s13 = sshll.u32 %s194_s12, 4  ;;  %s19_s13 = int_to_ptr.vmem [resolvable:$true] %s18_s13 }
   0x3   :  { %s158_s14 = scalar_lea.vmem %s19_s13, 512  ;;  %p163_p1 = scmp.lt.s32.totalorder %s19_s13, %s19_s13 }
   0x4   :  { %p159_p0 = scmp.ne.s32.totalorder %s19_s13, %s158_s14  ;;  %p164_p2 = scmp.lt.s32.totalorder %s158_s14, %s158_s14 }
   0x6   :  { %p165_p3 = por %p164_p2, %p163_p1 }
   0x8   :  { %p166_p4 = pnand %p165_p3, %p159_p0 }
   0xa   :  { %169 = shalt.err (!%p166_p4)
}
   0xb   :  { %s195_s15 = smov 128   ;;  %s196_s16 = smov 8  }
   0xc   :  { %24 = dma.hbm_to_vmem [thread:$0]  %s233_s1, 512, %s19_s13, [#allocation4], %s195_s15, %s195_s15, %s196_s16  }
   0xd   :  { %190 = dma.done.wait [#allocation4], 512  }
   0xe   :  { %191 = vsyncadd [#allocation4], 4294966784  ;;  %v197_v0 = vmov 0.0   ;;  %vm198_vm0 = vmmov 0   ;;  %v34_v1 = vld [vmem:[#allocation3 + $0x18] sm:$0xff]  ;;  %v33_v2 = vld [vmem:[#allocation3 + $0x10] sm:$0xff]  ;;  %v36_v6 = vstv %s234_s2 }
   0xf   :  { %133 = vmatprep.subr.mxu0 %v197_v0  ;;  %141 = vmatprep.mubr.msk.f32.mxu0 %vm198_vm0, %v197_v0  ;;  %v32_v3 = vld [vmem:[#allocation3 + $0x8] sm:$0xff]  ;;  %v31_v4 = vld [vmem:[#allocation3] sm:$0xff]  ;;  %vm37_vm1 = vcmask 261120   ;;  %s199_s22 = smov [#allocation6]  }
  0x10   :  { %134 = vmatpush3.msra.mxu0 %v34_v1  ;;  %v30_v5 = vld [vmem:[%s232_s0] sm:$0x1]  ;;  %s118_s23 = sshll.u32 %s199_s22, 4  ;;  %s119_s23 = int_to_ptr.vmem [resolvable:$true] %s118_s23 }
  0x11   :  { %135 = vmatprep.subr.mxu0 %v197_v0  ;;  %s170_s24 = scalar_lea.vmem %s119_s23, 16  ;;  %s174_s25 = scalar_lea.vmem %s119_s23, 32 }
  0x12   :  { %136 = vmatpush3.msra.mxu0 %v33_v2  ;;  %p171_p5 = scmp.ne.s32.totalorder %s119_s23, %s170_s24  ;;  %p175_p6 = scmp.lt.s32.totalorder %s119_s23, %s119_s23 }
  0x13   :  { %137 = vmatprep.subr.mxu0 %v197_v0  ;;  %p176_p7 = scmp.lt.s32.totalorder %s174_s25, %s170_s24 }
  0x14   :  { %138 = vmatpush3.msra.mxu0 %v32_v3 }
  0x15   :  { %139 = vmatprep.subr.mxu0 %v197_v0  ;;  %p177_p8 = por %p176_p7, %p175_p6 }
  0x16   :  { %140 = vmatpush3.msra.mxu0 %v31_v4 }
  0x17   :  { %142 = vmatmul.mubr.msk.f32.vlgmr.msra.gmra.mxu0 %vm37_vm1, %v30_v5  ;;  %p178_p9 = pnand %p177_p8, %p171_p5 }
  0xd7   :  { %v107_v7 = vpop.f32.mrf.mxu0 }
  0xd8   :  { %v108_v8 = vadd.f32 %v107_v7, %v36_v6 }
  0xd9   :  { %v143_v9 = vpop.f32.mrf.mxu0 }
  0xda   :  { %111 = vst [vmem:[#allocation6] sm:$0x1] %v108_v8 }
  0xdb   :  { %181 = shalt.err (!%p178_p9)
}
  0xdc   :  { %121 = dma.vmem_to_hbm [thread:$0]  %s119_s23, 16, %s235_s3, [#allocation5]  }
  0xdd   :  { %192 = dma.done.wait [#allocation5], 16  }
  0xde   :  { %193 = vsyncadd [#allocation5], 4294967280 }
  0xdf   :  { %125 = vsyncpa [#allocation4], 1 }
  0xe0   :  { %126 = vsyncpa [#allocation5], 1 }

</bundles_post_ra>
